<compile_context>
chip_gen: v5e
topology: v5e:2x2
jax: 0.10.0
libtpu: 0.0.40
codegen_flags: <defaults>
</compile_context>

<pallas_src>
import jax
import jax.numpy as jnp
from jax.experimental import pallas as pl
from jax.experimental.pallas import tpu as pltpu


def _round_up(x, m):
    return (x + m - 1) // m * m


def _make_mlp_kernel(n_inputs):
    """Kernel args: (x_0..x_{n-1}, w1_0..w1_{n-1}, b1, w2, b2, w3, b3, out)."""

    def kernel(*refs):
        x_refs = refs[:n_inputs]
        w1_refs = refs[n_inputs:2 * n_inputs]
        b1_ref, w2_ref, b2_ref, w3_ref, b3_ref, o_ref = refs[2 * n_inputs:]

        # Layer 1: sum of partial matmuls over the split feature blocks
        # (== concat(xs) @ w1).  bf16 operands, f32 accumulation.
        acc = jnp.dot(x_refs[0][...], w1_refs[0][...],
                      preferred_element_type=jnp.float32)
        for x_ref, w1_ref in zip(x_refs[1:], w1_refs[1:]):
            acc = acc + jnp.dot(x_ref[...], w1_ref[...],
                                preferred_element_type=jnp.float32)
        h = jnp.maximum(acc + b1_ref[...], 0.0).astype(jnp.bfloat16)

        # Layer 2
        h = jnp.dot(h, w2_ref[...], preferred_element_type=jnp.float32)
        h = jnp.maximum(h + b2_ref[...], 0.0).astype(jnp.bfloat16)

        # Layer 3 (no activation)
        q = jnp.dot(h, w3_ref[...], preferred_element_type=jnp.float32)
        q = q + b3_ref[...]
        o_ref[...] = q.astype(o_ref.dtype)

    return kernel


def qrdqn_forward(xs, params, *, action_size, n_support, tm=256):
    """xs: list of (B, f_i) arrays. Returns (B, action_size, n_support) f32."""
    w1, b1, w2, b2, w3, b3 = params
    n_in = len(xs)
    feat_sizes = [int(x.shape[1]) for x in xs]
    B = int(xs[0].shape[0])
    F = sum(feat_sizes)
    assert w1.shape[0] == F
    node = w1.shape[1]
    out_dim = w3.shape[1]
    assert out_dim == action_size * n_support

    # Batch tile: as large as possible (fills the MXU row dim) but no larger
    # than the (8-rounded) batch.  Default tm=256 is a multiple of 16 so the
    # bf16 activation blocks stay sublane-aligned when the grid has >1 step.
    tile = max(8, min(tm, _round_up(B, 8)))
    Bp = _round_up(B, tile)
    grid = (Bp // tile,)

    # bf16 MXU operands (accumulate in f32 inside the kernel); biases f32.
    xs_b = [x.astype(jnp.bfloat16) for x in xs]
    if Bp != B:
        xs_b = [jnp.pad(x, ((0, Bp - B), (0, 0))) for x in xs_b]

    # Split w1 into per-input row blocks so the concat happens as an in-kernel
    # sum of partial matmuls instead of a wrapper-side jnp.concatenate.
    offs = [0]
    for f in feat_sizes:
        offs.append(offs[-1] + f)
    w1_blocks = [w1[offs[i]:offs[i + 1]].astype(jnp.bfloat16)
                 for i in range(n_in)]
    w2_b = w2.astype(jnp.bfloat16)
    w3_b = w3.astype(jnp.bfloat16)

    const = lambda shape: pl.BlockSpec(shape, lambda i: (0, 0))

    in_specs = (
        [pl.BlockSpec((tile, f), lambda i: (i, 0)) for f in feat_sizes]  # x_i
        + [const((f, node)) for f in feat_sizes]                         # w1_i
        + [const((1, node)),                                             # b1
           const((node, node)), const((1, node)),                        # w2,b2
           const((node, out_dim)), const((1, out_dim))]                  # w3,b3
    )

    q_flat = pl.pallas_call(
        _make_mlp_kernel(n_in),
        out_shape=jax.ShapeDtypeStruct((Bp, out_dim), jnp.float32),
        grid=grid,
        in_specs=in_specs,
        out_specs=pl.BlockSpec((tile, out_dim), lambda i: (i, 0)),
        compiler_params=pltpu.CompilerParams(
            dimension_semantics=("parallel",)),
    )(*xs_b, *w1_blocks, b1, w2_b, b2, w3_b, b3)

    return q_flat[:B].reshape(B, action_size, n_support)


def init_params(key, flatten_size, node, action_size, n_support):
    """Deterministic synthetic init. Weights stored as (in, out) so the kernel
    computes x @ W + b (equivalent to torch's x @ W.T + b with W=(out,in))."""
    ks = jax.random.split(key, 6)

    def lin(kw, kb, fan_in, fan_out):
        bound = 1.0 / jnp.sqrt(fan_in)
        w = jax.random.uniform(kw, (fan_in, fan_out), jnp.float32, -bound, bound)
        b = jax.random.uniform(kb, (1, fan_out), jnp.float32, -bound, bound)
        return w, b

    w1, b1 = lin(ks[0], ks[1], flatten_size, node)
    w2, b2 = lin(ks[2], ks[3], node, node)
    w3, b3 = lin(ks[4], ks[5], node, action_size * n_support)
    return (w1, b1, w2, b2, w3, b3)


def reference_forward(xs, params, *, action_size, n_support):
    """Pure-JAX reference using the same bf16-operand / f32-accumulate mixed
    precision as the kernel."""
    w1, b1, w2, b2, w3, b3 = params
    cated = jnp.concatenate([x.astype(jnp.bfloat16) for x in xs], axis=-1)

    def dot(a, w):
        return jnp.dot(a, w.astype(jnp.bfloat16),
                       preferred_element_type=jnp.float32)

    h = jnp.maximum(dot(cated, w1) + b1, 0.0).astype(jnp.bfloat16)
    h = jnp.maximum(dot(h, w2) + b2, 0.0).astype(jnp.bfloat16)
    q = dot(h, w3) + b3
    return q.reshape(xs[0].shape[0], action_size, n_support)


if __name__ == "__main__":
    # Small shapes consistent with the module defaults (scaled down):
    # state_size = [(32,), (16,)]  (vector obs -> Identity preprocess)
    # node=128, hidden_n=2, action_size=(4,), n_support=64
    B = 32
    state_size = [(32,), (16,)]
    node = 128
    action_size = 4
    n_support = 64
    flatten_size = sum(s[0] for s in state_size)

    key = jax.random.PRNGKey(0)
    k_x1, k_x2, k_p = jax.random.split(key, 3)
    xs = [
        jax.random.normal(k_x1, (B, state_size[0][0]), jnp.float32),
        jax.random.normal(k_x2, (B, state_size[1][0]), jnp.float32),
    ]
    params = init_params(k_p, flatten_size, node, action_size, n_support)

    q = qrdqn_forward(xs, params, action_size=action_size,
                      n_support=n_support)
    q = jax.block_until_ready(q)

    q_ref = reference_forward(xs, params, action_size=action_size,
                              n_support=n_support)
    assert q.shape == (B, action_size, n_support), q.shape
    assert jnp.allclose(q, q_ref, atol=2e-2, rtol=2e-2), \
        float(jnp.max(jnp.abs(q - q_ref)))

    print("KERNEL_OK")
</pallas_src>

<mosaic_0001>
module attributes {stable_mosaic.version = 11 : i64} {
  func.func @kernel(%arg0: i32, %arg1: memref<32x32xbf16, #tpu.memory_space<vmem>>, %arg2: memref<32x16xbf16, #tpu.memory_space<vmem>>, %arg3: memref<32x128xbf16, #tpu.memory_space<vmem>>, %arg4: memref<16x128xbf16, #tpu.memory_space<vmem>>, %arg5: memref<1x128xf32, #tpu.memory_space<vmem>>, %arg6: memref<128x128xbf16, #tpu.memory_space<vmem>>, %arg7: memref<1x128xf32, #tpu.memory_space<vmem>>, %arg8: memref<128x256xbf16, #tpu.memory_space<vmem>>, %arg9: memref<1x256xf32, #tpu.memory_space<vmem>>, %arg10: memref<32x256xf32, #tpu.memory_space<vmem>>) attributes {dimension_semantics = [#tpu.dimension_semantics<parallel>], iteration_bounds = array<i64: 1>, scalar_prefetch = 0 : i64, scratch_operands = 0 : i64, tpu.core_type = #tpu.core_type<tc>, window_params = [{transform_indices = @transform_0, window_bounds = array<i64: 32, 32>}, {transform_indices = @transform_1, window_bounds = array<i64: 32, 16>}, {pipeline_mode = #tpu.pipeline_mode<synchronous>, transform_indices = @transform_2, window_bounds = array<i64: 32, 128>}, {pipeline_mode = #tpu.pipeline_mode<synchronous>, transform_indices = @transform_3, window_bounds = array<i64: 16, 128>}, {pipeline_mode = #tpu.pipeline_mode<synchronous>, transform_indices = @transform_4, window_bounds = array<i64: 1, 128>}, {pipeline_mode = #tpu.pipeline_mode<synchronous>, transform_indices = @transform_5, window_bounds = array<i64: 128, 128>}, {pipeline_mode = #tpu.pipeline_mode<synchronous>, transform_indices = @transform_6, window_bounds = array<i64: 1, 128>}, {pipeline_mode = #tpu.pipeline_mode<synchronous>, transform_indices = @transform_7, window_bounds = array<i64: 128, 256>}, {pipeline_mode = #tpu.pipeline_mode<synchronous>, transform_indices = @transform_8, window_bounds = array<i64: 1, 256>}, {transform_indices = @transform_9, window_bounds = array<i64: 32, 256>}]} {
    %c0 = arith.constant 0 : index
    %c0_0 = arith.constant 0 : index
    %0 = vector.load %arg1[%c0, %c0_0] : memref<32x32xbf16, #tpu.memory_space<vmem>>, vector<32x32xbf16>
    %c0_1 = arith.constant 0 : index
    %c0_2 = arith.constant 0 : index
    %1 = vector.load %arg3[%c0_1, %c0_2] : memref<32x128xbf16, #tpu.memory_space<vmem>>, vector<32x128xbf16>
    %cst = arith.constant dense<0.000000e+00> : vector<32x128xf32>
    %2 = tpu.matmul %0, %1, %cst {dimension_numbers = #tpu.dot_dimension_numbers<[1], [0], [0], [1], [0, 0, 1, 1], [], []>} : vector<32x32xbf16>, vector<32x128xbf16>, vector<32x128xf32> -> vector<32x128xf32>
    %c0_3 = arith.constant 0 : index
    %c0_4 = arith.constant 0 : index
    %3 = vector.load %arg2[%c0_3, %c0_4] : memref<32x16xbf16, #tpu.memory_space<vmem>>, vector<32x16xbf16>
    %c0_5 = arith.constant 0 : index
    %c0_6 = arith.constant 0 : index
    %4 = vector.load %arg4[%c0_5, %c0_6] : memref<16x128xbf16, #tpu.memory_space<vmem>>, vector<16x128xbf16>
    %cst_7 = arith.constant dense<0.000000e+00> : vector<32x128xf32>
    %5 = tpu.matmul %3, %4, %cst_7 {dimension_numbers = #tpu.dot_dimension_numbers<[1], [0], [0], [1], [0, 0, 1, 1], [], []>} : vector<32x16xbf16>, vector<16x128xbf16>, vector<32x128xf32> -> vector<32x128xf32>
    %6 = arith.addf %2, %5 : vector<32x128xf32>
    %c0_8 = arith.constant 0 : index
    %c0_9 = arith.constant 0 : index
    %7 = vector.load %arg5[%c0_8, %c0_9] : memref<1x128xf32, #tpu.memory_space<vmem>>, vector<1x128xf32>
    %8 = vector.broadcast %7 : vector<1x128xf32> to vector<32x128xf32>
    %9 = arith.addf %6, %8 : vector<32x128xf32>
    %cst_10 = arith.constant 0.000000e+00 : f32
    %10 = vector.broadcast %cst_10 : f32 to vector<32x128xf32>
    %11 = arith.maximumf %9, %10 : vector<32x128xf32>
    %12 = arith.truncf %11 : vector<32x128xf32> to vector<32x128xbf16>
    %c0_11 = arith.constant 0 : index
    %c0_12 = arith.constant 0 : index
    %13 = vector.load %arg6[%c0_11, %c0_12] : memref<128x128xbf16, #tpu.memory_space<vmem>>, vector<128x128xbf16>
    %cst_13 = arith.constant dense<0.000000e+00> : vector<32x128xf32>
    %14 = tpu.matmul %12, %13, %cst_13 {dimension_numbers = #tpu.dot_dimension_numbers<[1], [0], [0], [1], [0, 0, 1, 1], [], []>} : vector<32x128xbf16>, vector<128x128xbf16>, vector<32x128xf32> -> vector<32x128xf32>
    %c0_14 = arith.constant 0 : index
    %c0_15 = arith.constant 0 : index
    %15 = vector.load %arg7[%c0_14, %c0_15] : memref<1x128xf32, #tpu.memory_space<vmem>>, vector<1x128xf32>
    %16 = vector.broadcast %15 : vector<1x128xf32> to vector<32x128xf32>
    %17 = arith.addf %14, %16 : vector<32x128xf32>
    %cst_16 = arith.constant 0.000000e+00 : f32
    %18 = vector.broadcast %cst_16 : f32 to vector<32x128xf32>
    %19 = arith.maximumf %17, %18 : vector<32x128xf32>
    %20 = arith.truncf %19 : vector<32x128xf32> to vector<32x128xbf16>
    %c0_17 = arith.constant 0 : index
    %c0_18 = arith.constant 0 : index
    %21 = vector.load %arg8[%c0_17, %c0_18] : memref<128x256xbf16, #tpu.memory_space<vmem>>, vector<128x256xbf16>
    %cst_19 = arith.constant dense<0.000000e+00> : vector<32x256xf32>
    %22 = tpu.matmul %20, %21, %cst_19 {dimension_numbers = #tpu.dot_dimension_numbers<[1], [0], [0], [1], [0, 0, 1, 1], [], []>} : vector<32x128xbf16>, vector<128x256xbf16>, vector<32x256xf32> -> vector<32x256xf32>
    %c0_20 = arith.constant 0 : index
    %c0_21 = arith.constant 0 : index
    %23 = vector.load %arg9[%c0_20, %c0_21] : memref<1x256xf32, #tpu.memory_space<vmem>>, vector<1x256xf32>
    %24 = vector.broadcast %23 : vector<1x256xf32> to vector<32x256xf32>
    %25 = arith.addf %22, %24 : vector<32x256xf32>
    %c0_22 = arith.constant 0 : index
    %c0_23 = arith.constant 0 : index
    %26 = vector.load %arg10[%c0_22, %c0_23] : memref<32x256xf32, #tpu.memory_space<vmem>>, vector<32x256xf32>
    tpu.vector_store %arg10[%c0_22, %c0_23], %25 {strides = array<i32>} : memref<32x256xf32, #tpu.memory_space<vmem>>, vector<32x256xf32>,
    return
  }
  func.func @transform_0(%arg0: i32) -> (i32, i32) {
    %c0_i32 = arith.constant 0 : i32
    %c0_i32_0 = arith.constant 0 : i32
    return %arg0, %c0_i32 : i32, i32
  }
  func.func @transform_1(%arg0: i32) -> (i32, i32) {
    %c0_i32 = arith.constant 0 : i32
    %c0_i32_0 = arith.constant 0 : i32
    return %arg0, %c0_i32 : i32, i32
  }
  func.func @transform_2(%arg0: i32) -> (i32, i32) {
    %c0_i32 = arith.constant 0 : i32
    %c0_i32_0 = arith.constant 0 : i32
    %c0_i32_1 = arith.constant 0 : i32
    return %c0_i32, %c0_i32_0 : i32, i32
  }
  func.func @transform_3(%arg0: i32) -> (i32, i32) {
    %c0_i32 = arith.constant 0 : i32
    %c0_i32_0 = arith.constant 0 : i32
    %c0_i32_1 = arith.constant 0 : i32
    return %c0_i32, %c0_i32_0 : i32, i32
  }
  func.func @transform_4(%arg0: i32) -> (i32, i32) {
    %c0_i32 = arith.constant 0 : i32
    %c0_i32_0 = arith.constant 0 : i32
    %c0_i32_1 = arith.constant 0 : i32
    return %c0_i32, %c0_i32_0 : i32, i32
  }
  func.func @transform_5(%arg0: i32) -> (i32, i32) {
    %c0_i32 = arith.constant 0 : i32
    %c0_i32_0 = arith.constant 0 : i32
    %c0_i32_1 = arith.constant 0 : i32
    return %c0_i32, %c0_i32_0 : i32, i32
  }
  func.func @transform_6(%arg0: i32) -> (i32, i32) {
    %c0_i32 = arith.constant 0 : i32
    %c0_i32_0 = arith.constant 0 : i32
    %c0_i32_1 = arith.constant 0 : i32
    return %c0_i32, %c0_i32_0 : i32, i32
  }
  func.func @transform_7(%arg0: i32) -> (i32, i32) {
    %c0_i32 = arith.constant 0 : i32
    %c0_i32_0 = arith.constant 0 : i32
    %c0_i32_1 = arith.constant 0 : i32
    return %c0_i32, %c0_i32_0 : i32, i32
  }
  func.func @transform_8(%arg0: i32) -> (i32, i32) {
    %c0_i32 = arith.constant 0 : i32
    %c0_i32_0 = arith.constant 0 : i32
    %c0_i32_1 = arith.constant 0 : i32
    return %c0_i32, %c0_i32_0 : i32, i32
  }
  func.func @transform_9(%arg0: i32) -> (i32, i32) {
    %c0_i32 = arith.constant 0 : i32
    %c0_i32_0 = arith.constant 0 : i32
    return %arg0, %c0_i32 : i32, i32
  }
}

</mosaic_0001>

<bundles_post_ra>
// kernel: tpu_custom_call.1
= control target key start
LH: loop header
LB: loop body
LE: loop exit
PB: predicated region body
PF: predicated region fallthrough
CT: control target
= control target key end

     0   :  { %14 = vsyncpa [#allocation3], 0  ;;  %s837_s0 = inlined_call_operand.vmem [shape: bf16[32,32], index: 0, kind: input, shape index: {}]   ;;  %s838_s1 = inlined_call_operand.vmem [shape: bf16[32,16], index: 1, kind: input, shape index: {}]   ;;  %s839_s2 = inlined_call_operand.hbm [shape: bf16[32,128], index: 2, kind: input, shape index: {}]   ;;  %s840_s3 = inlined_call_operand.vmem [shape: bf16[16,128], index: 3, kind: input, shape index: {}]   ;;  %s841_s4 = inlined_call_operand.vmem [shape: f32[1,128], index: 4, kind: input, shape index: {}]   ;;  %s842_s5 = inlined_call_operand.hbm [shape: bf16[128,128], index: 5, kind: input, shape index: {}]   ;;  %s843_s6 = inlined_call_operand.vmem [shape: f32[1,128], index: 6, kind: input, shape index: {}]   ;;  %s844_s7 = inlined_call_operand.hbm [shape: bf16[128,256], index: 7, kind: input, shape index: {}]   ;;  %s845_s8 = inlined_call_operand.vmem [shape: f32[1,256], index: 8, kind: input, shape index: {}]   ;;  %s846_s9 = inlined_call_operand.hbm [shape: f32[32,256], index: 9, kind: output, shape index: {}]  }
   0x1   :  { %15 = vsyncpa [#allocation6], 0 }
   0x2   :  { %16 = vsyncpa [#allocation4], 0  ;;  %s42_s11 = sshll.u32 %s842_s5, 4  ;;  %s741_s12 = smov [#allocation5]   ;;  %s43_s11 = int_to_ptr.hbm [resolvable:$true] %s42_s11 }
   0x3   :  { %s44_s13 = sshll.u32 %s741_s12, 4  ;;  %s25_s16 = sshll.u32 %s839_s2, 4  ;;  %s45_s13 = int_to_ptr.vmem [resolvable:$true] %s44_s13  ;;  %s26_s16 = int_to_ptr.hbm [resolvable:$true] %s25_s16 }
   0x4   :  { %s742_s17 = smov 64   ;;  %s743_s18 = smov 4  }
   0x5   :  { %50 = dma.hbm_to_vmem [thread:$0]  %s43_s11, 1024, %s45_s13, [#allocation6], %s742_s17, %s742_s17, %s743_s18  }
   0x6   :  { %s744_s19 = smov [#allocation2]   ;;  %s57_s23 = sshll.u32 %s844_s7, 4  ;;  %s58_s23 = int_to_ptr.hbm [resolvable:$true] %s57_s23 }
   0x7   :  { %s27_s20 = sshll.u32 %s744_s19, 4  ;;  %s745_s5 = smov [#allocation7]   ;;  %s28_s20 = int_to_ptr.vmem [resolvable:$true] %s27_s20 }
   0x8   :  { %33 = dma.hbm_to_vmem [thread:$0]  %s26_s16, 256, %s28_s20, [#allocation3], %s742_s17, %s742_s17, %s743_s18  }
   0x9   :  { %s59_s24 = sshll.u32 %s745_s5, 4  ;;  %s746_s25 = smov 128   ;;  %s60_s24 = int_to_ptr.vmem [resolvable:$true] %s59_s24 }
   0xa   :  { %s747_s26 = smov 8  }
   0xb   :  { %65 = dma.hbm_to_vmem [thread:$0]  %s58_s23, 2048, %s60_s24, [#allocation6], %s746_s25, %s746_s25, %s747_s26  }
   0xc   :  { %735 = dma.done.wait [#allocation3], 256  }
   0xd   :  { %736 = vsyncadd [#allocation3], 4294967040 }
   0xe   :  { %737 = dma.done.wait [#allocation6], 3072  }
   0xf   :  { %738 = vsyncadd [#allocation6], 4294964224  ;;  %v594_v0 = vld [vmem:[%s840_s3] sm:$0xff]  ;;  %v591_v1 = vld [vmem:[#allocation2 + $0x8] sm:$0xff]  ;;  %vm111_vm0 = vcmask 130048   ;;  %vm159_vm1 = vcmask 261120  }
  0x10   :  { %v592_v2 = vld [vmem:[%s838_s1] sm:$0xff]  ;;  %125 = vmatpush.bf16.msra.mxu0 %v594_v0  ;;  %172 = vmatpush.bf16.msra.mxu1 %v591_v1  ;;  %v602_v4 = vld [vmem:[#allocation5 + $0x38] sm:$0xff]  ;;  %v600_v7 = vld [vmem:[#allocation5 + $0x28] sm:$0xff]  ;;  %s446_s18 = sshll.u32 %s846_s9, 4  ;;  %s749_s19 = smov 256   ;;  %s447_s18 = int_to_ptr.hbm [resolvable:$true] %s446_s18 }
  0x11   :  { %v590_v3 = vld [vmem:[#allocation2] sm:$0xff]  ;;  %267 = vmatpush.bf16.msra.mxu2 %v602_v4  ;;  %v593_v8 = vld [vmem:[%s838_s1 + $0x8] sm:$0xff]  ;;  %v599_v10 = vld [vmem:[#allocation5 + $0x20] sm:$0xff]  ;;  %s750_s20 = smov 16  }
  0x12   :  { %v601_v5 = vld [vmem:[#allocation5 + $0x30] sm:$0xff]  ;;  %v589_v9 = vld [vmem:[%s837_s0 + $0x8] sm:$0xff]  ;;  %v596_v13 = vld [vmem:[#allocation5 + $0x8] sm:$0xff] }
  0x13   :  { %472 = vmatmul.msk.bf16.vlgmr.msra.gmra.mxu0 %vm111_vm0, %v592_v2  ;;  %v588_v6 = vld [vmem:[%s837_s0] sm:$0xff]  ;;  %v598_v11 = vld [vmem:[#allocation5 + $0x18] sm:$0xff]  ;;  %v595_v14 = vld [vmem:[#allocation5] sm:$0xff] }
  0x14   :  { %173 = vmatpush.bf16.msra.mxu1 %v590_v3  ;;  %v597_v12 = vld [vmem:[#allocation5 + $0x10] sm:$0xff]  ;;  %v618_v18 = vld [vmem:[#allocation7 + $0x74] sm:$0xf0]  ;;  %v584_v21 = vld [vmem:[#allocation7 + $0x78] sm:$0xf0] }
  0x15   :  { %268 = vmatpush.bf16.msra.mxu2 %v601_v5  ;;  %v582_v17 = vld [vmem:[#allocation7 + $0x70] sm:$0xf]  ;;  %v617_v19 = vld [vmem:[#allocation7 + $0x74] sm:$0xf]  ;;  %v574_v22 = vld [vmem:[#allocation7 + $0x60] sm:$0xf] }
  0x16   :  { %v583_v20 = vor.u32 %v618_v18, %v582_v17  ;;  %v616_v23 = vld [vmem:[#allocation7 + $0x64] sm:$0xf0]  ;;  %v587_v24 = vor.u32 %v617_v19, %v584_v21  ;;  %v615_v25 = vld [vmem:[#allocation7 + $0x64] sm:$0xf]  ;;  %v576_v26 = vld [vmem:[#allocation7 + $0x68] sm:$0xf0] }
  0x17   :  { %490 = vmatmul.msk.bf16.vlgmr.msra.gmra.mxu1 %vm159_vm1, %v588_v6  ;;  %v575_v28 = vor.u32 %v616_v23, %v574_v22  ;;  %v637_v30 = vld [vmem:[%s841_s4] ss:$0 sm:$0xff]  ;;  %v579_v31 = vor.u32 %v615_v25, %v576_v26  ;;  %v614_v33 = vld [vmem:[#allocation7 + $0x54] sm:$0xf0]  ;;  %v613_v34 = vld [vmem:[#allocation7 + $0x54] sm:$0xf] }
  0x18   :  { %394 = vmatpush.bf16.msra.mxu3 %v583_v20  ;;  %413 = vmatpush.bf16.msrb.mxu0 %v587_v24  ;;  %v566_v32 = vld [vmem:[#allocation7 + $0x50] sm:$0xf]  ;;  %v568_v35 = vld [vmem:[#allocation7 + $0x58] sm:$0xf0]  ;;  %v558_v41 = vld [vmem:[#allocation7 + $0x40] sm:$0xf] }
  0x19   :  { %269 = vmatpush.bf16.msra.mxu2 %v600_v7  ;;  %619 = vmatpush.bf16.msrb.mxu1 %v587_v24  ;;  %v567_v37 = vor.u32 %v614_v33, %v566_v32  ;;  %v571_v40 = vor.u32 %v613_v34, %v568_v35  ;;  %v612_v42 = vld [vmem:[#allocation7 + $0x44] sm:$0xf0]  ;;  %v611_v43 = vld [vmem:[#allocation7 + $0x44] sm:$0xf]  ;;  %v560_v44 = vld [vmem:[#allocation7 + $0x48] sm:$0xf0] }
  0x1a   :  { %v559_v46 = vor.u32 %v612_v42, %v558_v41  ;;  %v563_v49 = vor.u32 %v611_v43, %v560_v44  ;;  %v550_v62 = vld [vmem:[#allocation7 + $0x30] sm:$0xf]  ;;  %v610_v63 = vld [vmem:[#allocation7 + $0x34] sm:$0xf0]  ;;  %v609_v0 = vld [vmem:[#allocation7 + $0x34] sm:$0xf] }
  0x1b   :  { %v551_v1 = vor.u32 %v610_v63, %v550_v62  ;;  %v552_v2 = vld [vmem:[#allocation7 + $0x38] sm:$0xf0]  ;;  %v542_v4 = vld [vmem:[#allocation7 + $0x20] sm:$0xf]  ;;  %v608_v5 = vld [vmem:[#allocation7 + $0x24] sm:$0xf0] }
  0x1c   :  { %395 = vmatpush.bf16.msra.mxu3 %v575_v28  ;;  %414 = vmatpush.bf16.msrb.mxu0 %v579_v31  ;;  %v555_v3 = vor.u32 %v609_v0, %v552_v2  ;;  %v607_v6 = vld [vmem:[#allocation7 + $0x24] sm:$0xf]  ;;  %v543_v7 = vor.u32 %v608_v5, %v542_v4  ;;  %v604_v17 = vld [vmem:[#allocation7 + $0x4] sm:$0xf0]  ;;  %v528_v20 = vld [vmem:[#allocation7 + $0x8] sm:$0xf0] }
  0x1d   :  { %270 = vmatpush.bf16.msra.mxu2 %v599_v10  ;;  %620 = vmatpush.bf16.msrb.mxu1 %v579_v31  ;;  %v534_v10 = vld [vmem:[#allocation7 + $0x10] sm:$0xf]  ;;  %v603_v18 = vld [vmem:[#allocation7 + $0x4] sm:$0xf] }
  0x1e   :  { %v531_v21 = vor.u32 %v603_v18, %v528_v20  ;;  %v638_v23 = vld [vmem:[%s843_s6] ss:$0 sm:$0xff]  ;;  %s748_s6 = smov [#allocation8]  }
  0x20   :  { %396 = vmatpush.bf16.msra.mxu3 %v567_v37  ;;  %415 = vmatpush.bf16.msrb.mxu0 %v571_v40  ;;  %v308_v37 = vld [vmem:[%s845_s8] sm:$0x3]  ;;  %s444_s8 = sshll.u32 %s748_s6, 4  ;;  %s445_s8 = int_to_ptr.vmem [resolvable:$true] %s444_s8 }
  0x21   :  { %271 = vmatpush.bf16.msra.mxu2 %v598_v11  ;;  %621 = vmatpush.bf16.msrb.mxu1 %v571_v40  ;;  %v606_v11 = vld [vmem:[#allocation7 + $0x14] sm:$0xf0]  ;;  %v310_v41 = vperm.slane %v308_v37, 0 }
  0x23   :  { %473 = vmatmul.msk.bf16.gmra.mxu0 %vm111_vm0, %v593_v8  ;;  %v544_v8 = vld [vmem:[#allocation7 + $0x28] sm:$0xf0] }
  0x24   :  { %397 = vmatpush.bf16.msra.mxu3 %v559_v46  ;;  %416 = vmatpush.bf16.msrb.mxu0 %v563_v49 }
  0x25   :  { %272 = vmatpush.bf16.msra.mxu2 %v597_v12  ;;  %622 = vmatpush.bf16.msrb.mxu1 %v563_v49  ;;  %v605_v12 = vld [vmem:[#allocation7 + $0x14] sm:$0xf] }
  0x27   :  { %491 = vmatmul.msk.bf16.gmra.mxu1 %vm159_vm1, %v589_v9  ;;  %v547_v9 = vor.u32 %v607_v6, %v544_v8 }
  0x28   :  { %398 = vmatpush.bf16.msra.mxu3 %v551_v1  ;;  %417 = vmatpush.bf16.msrb.mxu0 %v555_v3 }
  0x29   :  { %273 = vmatpush.bf16.msra.mxu2 %v596_v13  ;;  %623 = vmatpush.bf16.msrb.mxu1 %v555_v3  ;;  %v535_v13 = vor.u32 %v606_v11, %v534_v10 }
  0x2c   :  { %399 = vmatpush.bf16.msra.mxu3 %v543_v7  ;;  %418 = vmatpush.bf16.msrb.mxu0 %v547_v9 }
  0x2d   :  { %274 = vmatpush.bf16.msra.mxu2 %v595_v14  ;;  %624 = vmatpush.bf16.msrb.mxu1 %v547_v9  ;;  %v536_v14 = vld [vmem:[#allocation7 + $0x18] sm:$0xf0] }
  0x30   :  { %400 = vmatpush.bf16.msra.mxu3 %v535_v13 }
  0x90   :  { %v127_v15 = vpop.f32.mrf.mxu0 }
  0x94   :  { %v175_v16 = vpop.f32.mrf.mxu1 }
  0x95   :  { %v176_v29 = vadd.f32 %v175_v16, %v127_v15  ;;  %v539_v15 = vor.u32 %v605_v12, %v536_v14  ;;  %v526_v16 = vld [vmem:[#allocation7] sm:$0xf] }
  0x96   :  { %v527_v19 = vor.u32 %v604_v17, %v526_v16 }
  0x97   :  { %v189_v38 = vadd.f32 %v637_v30, %v176_v29  ;;  %419 = vmatpush.bf16.msrb.mxu0 %v539_v15  ;;  %625 = vmatpush.bf16.msrb.mxu1 %v539_v15 }
  0x98   :  { %v129_v27 = vpop.f32.mrf.mxu0  ;;  %401 = vmatpush.bf16.msra.mxu3 %v527_v19 }
  0x99   :  { %v193_v47 = vmax.f32 %v189_v38, 0.0  ;;  %v311_v38 = vperm.slane %v308_v37, 1 }
  0x9b   :  { %420 = vmatpush.bf16.msrb.mxu0 %v531_v21  ;;  %626 = vmatpush.bf16.msrb.mxu1 %v531_v21 }
  0x9c   :  { %v177_v36 = vpop.f32.mrf.mxu1 }
  0x9d   :  { %v178_v39 = vadd.f32 %v177_v36, %v129_v27 }
  0x9f   :  { %v190_v45 = vadd.f32 %v637_v30, %v178_v39 }
  0xa0   :  { %v132_v50 = vpop.f32.mrf.mxu0 }
  0xa1   :  { %v194_v48 = vmax.f32 %v190_v45, 0.0 }
  0xa3   :  { %v197_v51 = vpack.c.bf16 %v194_v48, %v193_v47 }
  0xa4   :  { %v180_v52 = vpop.f32.mrf.mxu1 }
  0xa5   :  { %275 = vmatmul.bf16.vlgmr.msra.gmra.mxu2 %v197_v51  ;;  %v181_v53 = vadd.f32 %v180_v52, %v132_v50 }
  0xa7   :  { %v191_v56 = vadd.f32 %v637_v30, %v181_v53 }
  0xa8   :  { %v134_v54 = vpop.f32.mrf.mxu0 }
  0xa9   :  { %v195_v59 = vmax.f32 %v191_v56, 0.0 }
  0xac   :  { %v182_v55 = vpop.f32.mrf.mxu1 }
  0xad   :  { %v183_v57 = vadd.f32 %v182_v55, %v134_v54 }
  0xaf   :  { %v192_v58 = vadd.f32 %v637_v30, %v183_v57 }
  0xb1   :  { %v196_v60 = vmax.f32 %v192_v58, 0.0 }
  0xb3   :  { %v198_v61 = vpack.c.bf16 %v196_v60, %v195_v59 }
  0xb5   :  { %280 = vmatmul.bf16.gmra.mxu2 %v198_v61 }
 0x128   :  { %v276_v22 = vpop.f32.mrf.mxu2 }
 0x129   :  { %v277_v24 = vadd.f32 %v638_v23, %v276_v22 }
 0x12b   :  { %v286_v27 = vmax.f32 %v277_v24, 0.0 }
 0x130   :  { %v278_v25 = vpop.f32.mrf.mxu2 }
 0x131   :  { %v279_v26 = vadd.f32 %v638_v23, %v278_v25 }
 0x133   :  { %v287_v28 = vmax.f32 %v279_v26, 0.0 }
 0x135   :  { %v290_v29 = vpack.c.bf16 %v287_v28, %v286_v27 }
 0x137   :  { %402 = vmatmul.bf16.vlgmr.msra.gmra.mxu3 %v290_v29  ;;  %421 = vmatmul.bf16.vlgmr.msrb.gmra.mxu0 %v290_v29 }
 0x138   :  { %v281_v30 = vpop.f32.mrf.mxu2 }
 0x139   :  { %v282_v31 = vadd.f32 %v638_v23, %v281_v30 }
 0x13b   :  { %v288_v34 = vmax.f32 %v282_v31, 0.0 }
 0x140   :  { %v283_v32 = vpop.f32.mrf.mxu2 }
 0x141   :  { %v284_v33 = vadd.f32 %v638_v23, %v283_v32 }
 0x143   :  { %v289_v35 = vmax.f32 %v284_v33, 0.0 }
 0x145   :  { %v291_v36 = vpack.c.bf16 %v289_v35, %v288_v34 }
 0x147   :  { %407 = vmatmul.bf16.gmra.mxu3 %v291_v36  ;;  %426 = vmatmul.bf16.vlgmr.msrb.gmra.mxu1 %v291_v36 }
 0x1b4   :  { %v422_v39 = vpop.f32.mrf.mxu0 }
 0x1b5   :  { %v423_v40 = vadd.f32 %v422_v39, %v311_v38 }
 0x1b7   :  { %433 = vst [vmem:[#allocation8 + $0x8] sm:$0xff] %v423_v40 }
 0x1ba   :  { %v403_v42 = vpop.f32.mrf.mxu3 }
 0x1bb   :  { %v404_v43 = vadd.f32 %v403_v42, %v310_v41 }
 0x1bc   :  { %v424_v44 = vpop.f32.mrf.mxu0 }
 0x1bd   :  { %432 = vst [vmem:[#allocation8] sm:$0xff] %v404_v43  ;;  %v425_v45 = vadd.f32 %v424_v44, %v311_v38 }
 0x1bf   :  { %435 = vst [vmem:[#allocation8 + $0x18] sm:$0xff] %v425_v45 }
 0x1c2   :  { %v405_v46 = vpop.f32.mrf.mxu3 }
 0x1c3   :  { %v406_v47 = vadd.f32 %v405_v46, %v310_v41 }
 0x1c4   :  { %v427_v48 = vpop.f32.mrf.mxu1 }
 0x1c5   :  { %434 = vst [vmem:[#allocation8 + $0x10] sm:$0xff] %v406_v47  ;;  %v428_v49 = vadd.f32 %v427_v48, %v311_v38 }
 0x1c7   :  { %437 = vst [vmem:[#allocation8 + $0x28] sm:$0xff] %v428_v49 }
 0x1ca   :  { %v408_v50 = vpop.f32.mrf.mxu3 }
 0x1cb   :  { %v409_v51 = vadd.f32 %v408_v50, %v310_v41 }
 0x1cc   :  { %v429_v52 = vpop.f32.mrf.mxu1 }
 0x1cd   :  { %436 = vst [vmem:[#allocation8 + $0x20] sm:$0xff] %v409_v51  ;;  %v430_v53 = vadd.f32 %v429_v52, %v311_v38 }
 0x1cf   :  { %439 = vst [vmem:[#allocation8 + $0x38] sm:$0xff] %v430_v53 }
 0x1d2   :  { %v410_v54 = vpop.f32.mrf.mxu3 }
 0x1d3   :  { %v411_v55 = vadd.f32 %v410_v54, %v310_v41 }
 0x1d5   :  { %438 = vst [vmem:[#allocation8 + $0x30] sm:$0xff] %v411_v55 }
 0x1d6   :  { %452 = dma.vmem_to_hbm [thread:$0]  %s445_s8, 1024, %s447_s18, [#allocation4], %s749_s19, %s749_s19, %s750_s20  }
 0x1d7   :  { %739 = dma.done.wait [#allocation4], 1024  }
 0x1d8   :  { %740 = vsyncadd [#allocation4], 4294966272 }
 0x1d9   :  { %457 = vsyncpa [#allocation3], 1 }
 0x1da   :  { %458 = vsyncpa [#allocation6], 1 }
 0x1db   :  { %459 = vsyncpa [#allocation4], 1 }

</bundles_post_ra>
